<compile_context>
chip_gen: v5e
topology: v5e:2x2
jax: 0.10.0
libtpu: 0.0.40
codegen_flags: <defaults>
</compile_context>

<pallas_src>
import functools

import jax
import jax.numpy as jnp
from jax.experimental import pallas as pl
from jax.experimental.pallas import tpu as pltpu

_LANES = 128
_MAX_ROWS_PER_TILE = 256   # 256 rows x 128 lanes x 4 B = 128 KiB per plane per buffer


def _flow_fields_kernel(hmat_ref, alpha_ref, out_ref, *,
                        num_planes, width, rows_per_tile, lanes):
    """One grid step == one (batch, spatial-row-tile) pair.

    hmat_ref : SMEM, flat float32 (B*D*9,)      -- pre-scaled 3x3 homographies
    alpha_ref: VMEM, (1, D, TR, 128) alphas     -- lane-dense flattened pixels
    out_ref  : VMEM, (1, 2, TR, 128) float32    -- composited (x, y) flow grid
    """
    b = pl.program_id(0)
    r = pl.program_id(1)
    tr = rows_per_tile

    # Linear pixel index of every (sublane, lane) element of this tile.
    row_i = jax.lax.broadcasted_iota(jnp.int32, (tr, lanes), 0)
    lane_i = jax.lax.broadcasted_iota(jnp.int32, (tr, lanes), 1)
    lin = (r * tr + row_i) * lanes + lane_i

    # Exact floor-div / mod by `width` via an f32 divide plus one integer correction
    # step (avoids vector integer division; exact while total pixels < 2**24).
    lin_f = lin.astype(jnp.float32)
    q = jnp.floor(lin_f / jnp.float32(width)).astype(jnp.int32)
    rem = lin - q * width
    under = rem < 0
    q = jnp.where(under, q - 1, q)
    rem = jnp.where(under, rem + width, rem)
    over = rem >= width
    q = jnp.where(over, q + 1, q)
    rem = jnp.where(over, rem - width, rem)
    x = rem.astype(jnp.float32)   # column index
    y = q.astype(jnp.float32)     # row index

    acc_x = jnp.zeros((tr, lanes), jnp.float32)
    acc_y = jnp.zeros((tr, lanes), jnp.float32)
    trans = jnp.ones((tr, lanes), jnp.float32)   # accumulated transmittance

    base = b * (num_planes * 9)
    # TODO(synk): for large D (>~16) move D onto an 'arbitrary' grid axis with VMEM
    # scratch accumulators; for the small static D here an unrolled loop is fine.
    for d in range(num_planes):
        off = base + d * 9
        h00 = hmat_ref[off + 0]
        h01 = hmat_ref[off + 1]
        h02 = hmat_ref[off + 2]
        h10 = hmat_ref[off + 3]
        h11 = hmat_ref[off + 4]
        h12 = hmat_ref[off + 5]
        h20 = hmat_ref[off + 6]
        h21 = hmat_ref[off + 7]
        h22 = hmat_ref[off + 8]

        # Rows 0/1 were pre-scaled by 1/half_w, 1/half_h in the wrapper, so the
        # [-1, 1] normalization collapses to `* inv_z - 1`.
        xw = h00 * x + h01 * y + h02
        yw = h10 * x + h11 * y + h12
        zw = h20 * x + h21 * y + h22
        inv_z = 1.0 / zw                      # single exact reciprocal per plane-pixel

        x_loc = xw * inv_z - 1.0
        y_loc = yw * inv_z - 1.0

        alpha = alpha_ref[0, d, :, :].astype(jnp.float32)
        w_d = alpha * trans
        acc_x = acc_x + w_d * x_loc
        acc_y = acc_y + w_d * y_loc
        trans = trans * (1.0 - alpha)

    out_ref[0, 0, :, :] = acc_x
    out_ref[0, 1, :, :] = acc_y


def compute_flow_fields(h_mats, warped_alphas):
    """Pallas equivalent of ComputeFlowFields.forward.

    h_mats:        (B, D, 3, 3) float
    warped_alphas: (B, D, 1, H, W) float
    returns:       (B, H, W, 2) float32  (same as PyTorch output layout)
    """
    B, D = h_mats.shape[:2]
    H, W = warped_alphas.shape[-2:]

    half_w = (W - 1.0) / 2.0
    half_h = (H - 1.0) / 2.0

    # Fold the [-1,1] normalization into the homographies (touches only B*D*9 scalars):
    # row 0 scaled by 1/half_w, row 1 by 1/half_h; kernel then does `* inv_z - 1`.
    row_scale = jnp.array([[1.0 / half_w], [1.0 / half_h], [1.0]], dtype=jnp.float32)
    h_flat = (h_mats.astype(jnp.float32) * row_scale).reshape(-1)     # (B*D*9,) -> SMEM

    # Lane-dense spatial layout: flatten (H, W) -> N pixels packed as (rows, 128).
    n_pix = H * W
    rows = -(-n_pix // _LANES)
    if rows <= _MAX_ROWS_PER_TILE:
        tile_rows = rows                      # full extent (no multiple-of-8 requirement)
        rows_padded = rows
    else:
        tile_rows = _MAX_ROWS_PER_TILE        # multiple of 8
        rows_padded = -(-rows // tile_rows) * tile_rows
    n_padded = rows_padded * _LANES
    # TODO(synk): in-kernel x/y recovery is exact only for images < 2**24 pixels.
    assert n_padded < (1 << 24), "image too large for f32-exact index recovery"

    alphas = warped_alphas.reshape(B, D, n_pix)
    if n_padded != n_pix:
        alphas = jnp.pad(alphas, ((0, 0), (0, 0), (0, n_padded - n_pix)))
    alphas = alphas.reshape(B, D, rows_padded, _LANES)

    grid = (B, rows_padded // tile_rows)

    out = pl.pallas_call(
        functools.partial(
            _flow_fields_kernel,
            num_planes=D, width=W, rows_per_tile=tile_rows, lanes=_LANES),
        out_shape=jax.ShapeDtypeStruct((B, 2, rows_padded, _LANES), jnp.float32),
        grid=grid,
        in_specs=[
            pl.BlockSpec(memory_space=pltpu.MemorySpace.SMEM),                  # homographies
            pl.BlockSpec((1, D, tile_rows, _LANES), lambda b, r: (b, 0, r, 0)),  # alphas
        ],
        out_specs=pl.BlockSpec((1, 2, tile_rows, _LANES), lambda b, r: (b, 0, r, 0)),
        compiler_params=pltpu.CompilerParams(
            dimension_semantics=("parallel", "parallel"),
            vmem_limit_bytes=32 * 1024 * 1024,
        ),
    )(h_flat, alphas)

    # Back to image layout. The channel-last permute is kept as XLA glue because the
    # module contract requires (B, H, W, 2); a 2-wide lane store in-kernel would be worse.
    out = out.reshape(B, 2, n_padded)[:, :, :n_pix].reshape(B, 2, H, W)
    return jnp.transpose(out, (0, 2, 3, 1))


def _reference(h_mats, warped_alphas):
    """Pure-JAX reference mirroring the PyTorch math (bmm on homogeneous coords +
    MPI over-compositing)."""
    B, D = h_mats.shape[:2]
    H, W = warped_alphas.shape[-2:]
    xg, yg = jnp.meshgrid(
        jnp.arange(W, dtype=jnp.float32), jnp.arange(H, dtype=jnp.float32)
    )
    xy = jnp.stack([xg, yg, jnp.ones_like(xg)], axis=-1)               # (H, W, 3)
    warped = jnp.einsum("bdij,hwj->bdhwi", h_mats.astype(jnp.float32), xy)
    x_locs = warped[..., 0] / warped[..., 2]
    y_locs = warped[..., 1] / warped[..., 2]
    x_locs = (x_locs - (W - 1.0) / 2.0) / ((W - 1.0) / 2.0)
    y_locs = (y_locs - (H - 1.0) / 2.0) / ((H - 1.0) / 2.0)
    grid = jnp.stack([x_locs, y_locs], axis=2)                         # (B, D, 2, H, W)

    alpha = warped_alphas.astype(jnp.float32).reshape(B, D, 1, H, W)
    trans = jnp.cumprod(1.0 - alpha, axis=1)
    trans = jnp.concatenate([jnp.ones_like(trans[:, :1]), trans[:, :-1]], axis=1)
    weights = alpha * trans
    comp = jnp.sum(weights * grid, axis=1)                             # (B, 2, H, W)
    return jnp.transpose(comp, (0, 2, 3, 1))                          # (B, H, W, 2)


if __name__ == "__main__":
    # Small shapes consistent with the module: batch=2, num_planes=4, 16x16 images.
    B, D, H, W = 2, 4, 16, 16
    key = jax.random.PRNGKey(0)
    k1, k2 = jax.random.split(key)

    # Near-identity homographies (keeps the perspective denominator well away from 0).
    eye = jnp.broadcast_to(jnp.eye(3, dtype=jnp.float32), (B, D, 3, 3))
    h_mats = eye + 0.01 * jax.random.normal(k1, (B, D, 3, 3), dtype=jnp.float32)

    # Per-plane alpha maps in [0, 1], PyTorch shape (B, D, 1, H, W).
    warped_alphas = jax.random.uniform(k2, (B, D, 1, H, W), dtype=jnp.float32)

    out = compute_flow_fields(h_mats, warped_alphas)
    out = jax.block_until_ready(out)

    ref = _reference(h_mats, warped_alphas)
    assert out.shape == (B, H, W, 2), out.shape
    err = float(jnp.max(jnp.abs(out - ref)))
    assert jnp.allclose(out, ref, rtol=1e-5, atol=1e-5), err

    print("KERNEL_OK")
</pallas_src>

<mosaic_0001>
module attributes {stable_mosaic.version = 11 : i64} {
  func.func @_flow_fields_kernel(%arg0: i32, %arg1: i32, %arg2: memref<72xf32, #tpu.memory_space<smem>>, %arg3: memref<1x4x2x128xf32, #tpu.memory_space<vmem>>, %arg4: memref<1x2x2x128xf32, #tpu.memory_space<vmem>>) attributes {dimension_semantics = [#tpu.dimension_semantics<parallel>, #tpu.dimension_semantics<parallel>], iteration_bounds = array<i64: 2, 1>, scalar_prefetch = 0 : i64, scratch_operands = 0 : i64, tpu.core_type = #tpu.core_type<tc>, window_params = [{transform_indices = @transform_0, window_bounds = array<i64: 72>}, {transform_indices = @transform_1, window_bounds = array<i64: 1, 4, 2, 128>}, {transform_indices = @transform_2, window_bounds = array<i64: 1, 2, 2, 128>}]} {
    %0 = tpu.iota {dimensions = array<i32: 0>} : vector<2x128xi32>
    %1 = tpu.iota {dimensions = array<i32: 1>} : vector<2x128xi32>
    %c2_i32 = arith.constant 2 : i32
    %2 = arith.muli %arg1, %c2_i32 : i32
    %3 = vector.broadcast %2 : i32 to vector<2x128xi32>
    %4 = arith.addi %3, %0 : vector<2x128xi32>
    %c128_i32 = arith.constant 128 : i32
    %5 = vector.broadcast %c128_i32 : i32 to vector<2x128xi32>
    %6 = arith.muli %4, %5 : vector<2x128xi32>
    %7 = arith.addi %6, %1 : vector<2x128xi32>
    %8 = arith.sitofp %7 : vector<2x128xi32> to vector<2x128xf32>
    %cst = arith.constant 1.600000e+01 : f32
    %9 = vector.broadcast %cst : f32 to vector<2x128xf32>
    %10 = arith.divf %8, %9 : vector<2x128xf32>
    %11 = math.floor %10 : vector<2x128xf32>
    %12 = arith.fptosi %11 : vector<2x128xf32> to vector<2x128xi32>
    %c16_i32 = arith.constant 16 : i32
    %13 = vector.broadcast %c16_i32 : i32 to vector<2x128xi32>
    %14 = arith.muli %12, %13 : vector<2x128xi32>
    %15 = arith.subi %7, %14 : vector<2x128xi32>
    %c0_i32 = arith.constant 0 : i32
    %16 = vector.broadcast %c0_i32 : i32 to vector<2x128xi32>
    %17 = arith.cmpi slt, %15, %16 : vector<2x128xi32>
    %c1_i32 = arith.constant 1 : i32
    %18 = vector.broadcast %c1_i32 : i32 to vector<2x128xi32>
    %19 = arith.subi %12, %18 : vector<2x128xi32>
    %20 = arith.select %17, %19, %12 : vector<2x128xi1>, vector<2x128xi32>
    %c16_i32_0 = arith.constant 16 : i32
    %21 = vector.broadcast %c16_i32_0 : i32 to vector<2x128xi32>
    %22 = arith.addi %15, %21 : vector<2x128xi32>
    %23 = arith.select %17, %22, %15 : vector<2x128xi1>, vector<2x128xi32>
    %c16_i32_1 = arith.constant 16 : i32
    %24 = vector.broadcast %c16_i32_1 : i32 to vector<2x128xi32>
    %25 = arith.cmpi sge, %23, %24 : vector<2x128xi32>
    %c1_i32_2 = arith.constant 1 : i32
    %26 = vector.broadcast %c1_i32_2 : i32 to vector<2x128xi32>
    %27 = arith.addi %20, %26 : vector<2x128xi32>
    %28 = arith.select %25, %27, %20 : vector<2x128xi1>, vector<2x128xi32>
    %c16_i32_3 = arith.constant 16 : i32
    %29 = vector.broadcast %c16_i32_3 : i32 to vector<2x128xi32>
    %30 = arith.subi %23, %29 : vector<2x128xi32>
    %31 = arith.select %25, %30, %23 : vector<2x128xi1>, vector<2x128xi32>
    %32 = arith.sitofp %31 : vector<2x128xi32> to vector<2x128xf32>
    %33 = arith.sitofp %28 : vector<2x128xi32> to vector<2x128xf32>
    %cst_4 = arith.constant 0.000000e+00 : f32
    %34 = vector.broadcast %cst_4 : f32 to vector<2x128xf32>
    %cst_5 = arith.constant 0.000000e+00 : f32
    %35 = vector.broadcast %cst_5 : f32 to vector<2x128xf32>
    %cst_6 = arith.constant 1.000000e+00 : f32
    %36 = vector.broadcast %cst_6 : f32 to vector<2x128xf32>
    %c36_i32 = arith.constant 36 : i32
    %37 = arith.muli %arg0, %c36_i32 : i32
    %c0_i32_7 = arith.constant 0 : i32
    %38 = arith.addi %37, %c0_i32_7 : i32
    %c0_i32_8 = arith.constant 0 : i32
    %39 = arith.addi %38, %c0_i32_8 : i32
    %40 = arith.index_cast %39 : i32 to index
    %41 = memref.load %arg2[%40] : memref<72xf32, #tpu.memory_space<smem>>
    %c1_i32_9 = arith.constant 1 : i32
    %42 = arith.addi %38, %c1_i32_9 : i32
    %43 = arith.index_cast %42 : i32 to index
    %44 = memref.load %arg2[%43] : memref<72xf32, #tpu.memory_space<smem>>
    %c2_i32_10 = arith.constant 2 : i32
    %45 = arith.addi %38, %c2_i32_10 : i32
    %46 = arith.index_cast %45 : i32 to index
    %47 = memref.load %arg2[%46] : memref<72xf32, #tpu.memory_space<smem>>
    %c3_i32 = arith.constant 3 : i32
    %48 = arith.addi %38, %c3_i32 : i32
    %49 = arith.index_cast %48 : i32 to index
    %50 = memref.load %arg2[%49] : memref<72xf32, #tpu.memory_space<smem>>
    %c4_i32 = arith.constant 4 : i32
    %51 = arith.addi %38, %c4_i32 : i32
    %52 = arith.index_cast %51 : i32 to index
    %53 = memref.load %arg2[%52] : memref<72xf32, #tpu.memory_space<smem>>
    %c5_i32 = arith.constant 5 : i32
    %54 = arith.addi %38, %c5_i32 : i32
    %55 = arith.index_cast %54 : i32 to index
    %56 = memref.load %arg2[%55] : memref<72xf32, #tpu.memory_space<smem>>
    %c6_i32 = arith.constant 6 : i32
    %57 = arith.addi %38, %c6_i32 : i32
    %58 = arith.index_cast %57 : i32 to index
    %59 = memref.load %arg2[%58] : memref<72xf32, #tpu.memory_space<smem>>
    %c7_i32 = arith.constant 7 : i32
    %60 = arith.addi %38, %c7_i32 : i32
    %61 = arith.index_cast %60 : i32 to index
    %62 = memref.load %arg2[%61] : memref<72xf32, #tpu.memory_space<smem>>
    %c8_i32 = arith.constant 8 : i32
    %63 = arith.addi %38, %c8_i32 : i32
    %64 = arith.index_cast %63 : i32 to index
    %65 = memref.load %arg2[%64] : memref<72xf32, #tpu.memory_space<smem>>
    %66 = vector.broadcast %41 : f32 to vector<2x128xf32>
    %67 = arith.mulf %66, %32 : vector<2x128xf32>
    %68 = vector.broadcast %44 : f32 to vector<2x128xf32>
    %69 = arith.mulf %68, %33 : vector<2x128xf32>
    %70 = arith.addf %67, %69 : vector<2x128xf32>
    %71 = vector.broadcast %47 : f32 to vector<2x128xf32>
    %72 = arith.addf %70, %71 : vector<2x128xf32>
    %73 = vector.broadcast %50 : f32 to vector<2x128xf32>
    %74 = arith.mulf %73, %32 : vector<2x128xf32>
    %75 = vector.broadcast %53 : f32 to vector<2x128xf32>
    %76 = arith.mulf %75, %33 : vector<2x128xf32>
    %77 = arith.addf %74, %76 : vector<2x128xf32>
    %78 = vector.broadcast %56 : f32 to vector<2x128xf32>
    %79 = arith.addf %77, %78 : vector<2x128xf32>
    %80 = vector.broadcast %59 : f32 to vector<2x128xf32>
    %81 = arith.mulf %80, %32 : vector<2x128xf32>
    %82 = vector.broadcast %62 : f32 to vector<2x128xf32>
    %83 = arith.mulf %82, %33 : vector<2x128xf32>
    %84 = arith.addf %81, %83 : vector<2x128xf32>
    %85 = vector.broadcast %65 : f32 to vector<2x128xf32>
    %86 = arith.addf %84, %85 : vector<2x128xf32>
    %cst_11 = arith.constant 1.000000e+00 : f32
    %87 = vector.broadcast %cst_11 : f32 to vector<2x128xf32>
    %88 = arith.divf %87, %86 : vector<2x128xf32>
    %89 = arith.mulf %72, %88 : vector<2x128xf32>
    %cst_12 = arith.constant 1.000000e+00 : f32
    %90 = vector.broadcast %cst_12 : f32 to vector<2x128xf32>
    %91 = arith.subf %89, %90 : vector<2x128xf32>
    %92 = arith.mulf %79, %88 : vector<2x128xf32>
    %cst_13 = arith.constant 1.000000e+00 : f32
    %93 = vector.broadcast %cst_13 : f32 to vector<2x128xf32>
    %94 = arith.subf %92, %93 : vector<2x128xf32>
    %c0 = arith.constant 0 : index
    %c0_14 = arith.constant 0 : index
    %c0_15 = arith.constant 0 : index
    %c0_16 = arith.constant 0 : index
    %95 = vector.load %arg3[%c0, %c0_14, %c0_15, %c0_16] : memref<1x4x2x128xf32, #tpu.memory_space<vmem>>, vector<1x1x2x128xf32>
    %96 = vector.shape_cast %95 : vector<1x1x2x128xf32> to vector<2x128xf32>
    %97 = arith.mulf %96, %36 : vector<2x128xf32>
    %98 = arith.mulf %97, %91 : vector<2x128xf32>
    %99 = arith.addf %34, %98 : vector<2x128xf32>
    %100 = arith.mulf %97, %94 : vector<2x128xf32>
    %101 = arith.addf %35, %100 : vector<2x128xf32>
    %cst_17 = arith.constant 1.000000e+00 : f32
    %102 = vector.broadcast %cst_17 : f32 to vector<2x128xf32>
    %103 = arith.subf %102, %96 : vector<2x128xf32>
    %104 = arith.mulf %36, %103 : vector<2x128xf32>
    %c9_i32 = arith.constant 9 : i32
    %105 = arith.addi %37, %c9_i32 : i32
    %c0_i32_18 = arith.constant 0 : i32
    %106 = arith.addi %105, %c0_i32_18 : i32
    %107 = arith.index_cast %106 : i32 to index
    %108 = memref.load %arg2[%107] : memref<72xf32, #tpu.memory_space<smem>>
    %c1_i32_19 = arith.constant 1 : i32
    %109 = arith.addi %105, %c1_i32_19 : i32
    %110 = arith.index_cast %109 : i32 to index
    %111 = memref.load %arg2[%110] : memref<72xf32, #tpu.memory_space<smem>>
    %c2_i32_20 = arith.constant 2 : i32
    %112 = arith.addi %105, %c2_i32_20 : i32
    %113 = arith.index_cast %112 : i32 to index
    %114 = memref.load %arg2[%113] : memref<72xf32, #tpu.memory_space<smem>>
    %c3_i32_21 = arith.constant 3 : i32
    %115 = arith.addi %105, %c3_i32_21 : i32
    %116 = arith.index_cast %115 : i32 to index
    %117 = memref.load %arg2[%116] : memref<72xf32, #tpu.memory_space<smem>>
    %c4_i32_22 = arith.constant 4 : i32
    %118 = arith.addi %105, %c4_i32_22 : i32
    %119 = arith.index_cast %118 : i32 to index
    %120 = memref.load %arg2[%119] : memref<72xf32, #tpu.memory_space<smem>>
    %c5_i32_23 = arith.constant 5 : i32
    %121 = arith.addi %105, %c5_i32_23 : i32
    %122 = arith.index_cast %121 : i32 to index
    %123 = memref.load %arg2[%122] : memref<72xf32, #tpu.memory_space<smem>>
    %c6_i32_24 = arith.constant 6 : i32
    %124 = arith.addi %105, %c6_i32_24 : i32
    %125 = arith.index_cast %124 : i32 to index
    %126 = memref.load %arg2[%125] : memref<72xf32, #tpu.memory_space<smem>>
    %c7_i32_25 = arith.constant 7 : i32
    %127 = arith.addi %105, %c7_i32_25 : i32
    %128 = arith.index_cast %127 : i32 to index
    %129 = memref.load %arg2[%128] : memref<72xf32, #tpu.memory_space<smem>>
    %c8_i32_26 = arith.constant 8 : i32
    %130 = arith.addi %105, %c8_i32_26 : i32
    %131 = arith.index_cast %130 : i32 to index
    %132 = memref.load %arg2[%131] : memref<72xf32, #tpu.memory_space<smem>>
    %133 = vector.broadcast %108 : f32 to vector<2x128xf32>
    %134 = arith.mulf %133, %32 : vector<2x128xf32>
    %135 = vector.broadcast %111 : f32 to vector<2x128xf32>
    %136 = arith.mulf %135, %33 : vector<2x128xf32>
    %137 = arith.addf %134, %136 : vector<2x128xf32>
    %138 = vector.broadcast %114 : f32 to vector<2x128xf32>
    %139 = arith.addf %137, %138 : vector<2x128xf32>
    %140 = vector.broadcast %117 : f32 to vector<2x128xf32>
    %141 = arith.mulf %140, %32 : vector<2x128xf32>
    %142 = vector.broadcast %120 : f32 to vector<2x128xf32>
    %143 = arith.mulf %142, %33 : vector<2x128xf32>
    %144 = arith.addf %141, %143 : vector<2x128xf32>
    %145 = vector.broadcast %123 : f32 to vector<2x128xf32>
    %146 = arith.addf %144, %145 : vector<2x128xf32>
    %147 = vector.broadcast %126 : f32 to vector<2x128xf32>
    %148 = arith.mulf %147, %32 : vector<2x128xf32>
    %149 = vector.broadcast %129 : f32 to vector<2x128xf32>
    %150 = arith.mulf %149, %33 : vector<2x128xf32>
    %151 = arith.addf %148, %150 : vector<2x128xf32>
    %152 = vector.broadcast %132 : f32 to vector<2x128xf32>
    %153 = arith.addf %151, %152 : vector<2x128xf32>
    %cst_27 = arith.constant 1.000000e+00 : f32
    %154 = vector.broadcast %cst_27 : f32 to vector<2x128xf32>
    %155 = arith.divf %154, %153 : vector<2x128xf32>
    %156 = arith.mulf %139, %155 : vector<2x128xf32>
    %cst_28 = arith.constant 1.000000e+00 : f32
    %157 = vector.broadcast %cst_28 : f32 to vector<2x128xf32>
    %158 = arith.subf %156, %157 : vector<2x128xf32>
    %159 = arith.mulf %146, %155 : vector<2x128xf32>
    %cst_29 = arith.constant 1.000000e+00 : f32
    %160 = vector.broadcast %cst_29 : f32 to vector<2x128xf32>
    %161 = arith.subf %159, %160 : vector<2x128xf32>
    %c0_30 = arith.constant 0 : index
    %c1 = arith.constant 1 : index
    %c0_31 = arith.constant 0 : index
    %c0_32 = arith.constant 0 : index
    %162 = vector.load %arg3[%c0_30, %c1, %c0_31, %c0_32] : memref<1x4x2x128xf32, #tpu.memory_space<vmem>>, vector<1x1x2x128xf32>
    %163 = vector.shape_cast %162 : vector<1x1x2x128xf32> to vector<2x128xf32>
    %164 = arith.mulf %163, %104 : vector<2x128xf32>
    %165 = arith.mulf %164, %158 : vector<2x128xf32>
    %166 = arith.addf %99, %165 : vector<2x128xf32>
    %167 = arith.mulf %164, %161 : vector<2x128xf32>
    %168 = arith.addf %101, %167 : vector<2x128xf32>
    %cst_33 = arith.constant 1.000000e+00 : f32
    %169 = vector.broadcast %cst_33 : f32 to vector<2x128xf32>
    %170 = arith.subf %169, %163 : vector<2x128xf32>
    %171 = arith.mulf %104, %170 : vector<2x128xf32>
    %c18_i32 = arith.constant 18 : i32
    %172 = arith.addi %37, %c18_i32 : i32
    %c0_i32_34 = arith.constant 0 : i32
    %173 = arith.addi %172, %c0_i32_34 : i32
    %174 = arith.index_cast %173 : i32 to index
    %175 = memref.load %arg2[%174] : memref<72xf32, #tpu.memory_space<smem>>
    %c1_i32_35 = arith.constant 1 : i32
    %176 = arith.addi %172, %c1_i32_35 : i32
    %177 = arith.index_cast %176 : i32 to index
    %178 = memref.load %arg2[%177] : memref<72xf32, #tpu.memory_space<smem>>
    %c2_i32_36 = arith.constant 2 : i32
    %179 = arith.addi %172, %c2_i32_36 : i32
    %180 = arith.index_cast %179 : i32 to index
    %181 = memref.load %arg2[%180] : memref<72xf32, #tpu.memory_space<smem>>
    %c3_i32_37 = arith.constant 3 : i32
    %182 = arith.addi %172, %c3_i32_37 : i32
    %183 = arith.index_cast %182 : i32 to index
    %184 = memref.load %arg2[%183] : memref<72xf32, #tpu.memory_space<smem>>
    %c4_i32_38 = arith.constant 4 : i32
    %185 = arith.addi %172, %c4_i32_38 : i32
    %186 = arith.index_cast %185 : i32 to index
    %187 = memref.load %arg2[%186] : memref<72xf32, #tpu.memory_space<smem>>
    %c5_i32_39 = arith.constant 5 : i32
    %188 = arith.addi %172, %c5_i32_39 : i32
    %189 = arith.index_cast %188 : i32 to index
    %190 = memref.load %arg2[%189] : memref<72xf32, #tpu.memory_space<smem>>
    %c6_i32_40 = arith.constant 6 : i32
    %191 = arith.addi %172, %c6_i32_40 : i32
    %192 = arith.index_cast %191 : i32 to index
    %193 = memref.load %arg2[%192] : memref<72xf32, #tpu.memory_space<smem>>
    %c7_i32_41 = arith.constant 7 : i32
    %194 = arith.addi %172, %c7_i32_41 : i32
    %195 = arith.index_cast %194 : i32 to index
    %196 = memref.load %arg2[%195] : memref<72xf32, #tpu.memory_space<smem>>
    %c8_i32_42 = arith.constant 8 : i32
    %197 = arith.addi %172, %c8_i32_42 : i32
    %198 = arith.index_cast %197 : i32 to index
    %199 = memref.load %arg2[%198] : memref<72xf32, #tpu.memory_space<smem>>
    %200 = vector.broadcast %175 : f32 to vector<2x128xf32>
    %201 = arith.mulf %200, %32 : vector<2x128xf32>
    %202 = vector.broadcast %178 : f32 to vector<2x128xf32>
    %203 = arith.mulf %202, %33 : vector<2x128xf32>
    %204 = arith.addf %201, %203 : vector<2x128xf32>
    %205 = vector.broadcast %181 : f32 to vector<2x128xf32>
    %206 = arith.addf %204, %205 : vector<2x128xf32>
    %207 = vector.broadcast %184 : f32 to vector<2x128xf32>
    %208 = arith.mulf %207, %32 : vector<2x128xf32>
    %209 = vector.broadcast %187 : f32 to vector<2x128xf32>
    %210 = arith.mulf %209, %33 : vector<2x128xf32>
    %211 = arith.addf %208, %210 : vector<2x128xf32>
    %212 = vector.broadcast %190 : f32 to vector<2x128xf32>
    %213 = arith.addf %211, %212 : vector<2x128xf32>
    %214 = vector.broadcast %193 : f32 to vector<2x128xf32>
    %215 = arith.mulf %214, %32 : vector<2x128xf32>
    %216 = vector.broadcast %196 : f32 to vector<2x128xf32>
    %217 = arith.mulf %216, %33 : vector<2x128xf32>
    %218 = arith.addf %215, %217 : vector<2x128xf32>
    %219 = vector.broadcast %199 : f32 to vector<2x128xf32>
    %220 = arith.addf %218, %219 : vector<2x128xf32>
    %cst_43 = arith.constant 1.000000e+00 : f32
    %221 = vector.broadcast %cst_43 : f32 to vector<2x128xf32>
    %222 = arith.divf %221, %220 : vector<2x128xf32>
    %223 = arith.mulf %206, %222 : vector<2x128xf32>
    %cst_44 = arith.constant 1.000000e+00 : f32
    %224 = vector.broadcast %cst_44 : f32 to vector<2x128xf32>
    %225 = arith.subf %223, %224 : vector<2x128xf32>
    %226 = arith.mulf %213, %222 : vector<2x128xf32>
    %cst_45 = arith.constant 1.000000e+00 : f32
    %227 = vector.broadcast %cst_45 : f32 to vector<2x128xf32>
    %228 = arith.subf %226, %227 : vector<2x128xf32>
    %c0_46 = arith.constant 0 : index
    %c2 = arith.constant 2 : index
    %c0_47 = arith.constant 0 : index
    %c0_48 = arith.constant 0 : index
    %229 = vector.load %arg3[%c0_46, %c2, %c0_47, %c0_48] : memref<1x4x2x128xf32, #tpu.memory_space<vmem>>, vector<1x1x2x128xf32>
    %230 = vector.shape_cast %229 : vector<1x1x2x128xf32> to vector<2x128xf32>
    %231 = arith.mulf %230, %171 : vector<2x128xf32>
    %232 = arith.mulf %231, %225 : vector<2x128xf32>
    %233 = arith.addf %166, %232 : vector<2x128xf32>
    %234 = arith.mulf %231, %228 : vector<2x128xf32>
    %235 = arith.addf %168, %234 : vector<2x128xf32>
    %cst_49 = arith.constant 1.000000e+00 : f32
    %236 = vector.broadcast %cst_49 : f32 to vector<2x128xf32>
    %237 = arith.subf %236, %230 : vector<2x128xf32>
    %238 = arith.mulf %171, %237 : vector<2x128xf32>
    %c27_i32 = arith.constant 27 : i32
    %239 = arith.addi %37, %c27_i32 : i32
    %c0_i32_50 = arith.constant 0 : i32
    %240 = arith.addi %239, %c0_i32_50 : i32
    %241 = arith.index_cast %240 : i32 to index
    %242 = memref.load %arg2[%241] : memref<72xf32, #tpu.memory_space<smem>>
    %c1_i32_51 = arith.constant 1 : i32
    %243 = arith.addi %239, %c1_i32_51 : i32
    %244 = arith.index_cast %243 : i32 to index
    %245 = memref.load %arg2[%244] : memref<72xf32, #tpu.memory_space<smem>>
    %c2_i32_52 = arith.constant 2 : i32
    %246 = arith.addi %239, %c2_i32_52 : i32
    %247 = arith.index_cast %246 : i32 to index
    %248 = memref.load %arg2[%247] : memref<72xf32, #tpu.memory_space<smem>>
    %c3_i32_53 = arith.constant 3 : i32
    %249 = arith.addi %239, %c3_i32_53 : i32
    %250 = arith.index_cast %249 : i32 to index
    %251 = memref.load %arg2[%250] : memref<72xf32, #tpu.memory_space<smem>>
    %c4_i32_54 = arith.constant 4 : i32
    %252 = arith.addi %239, %c4_i32_54 : i32
    %253 = arith.index_cast %252 : i32 to index
    %254 = memref.load %arg2[%253] : memref<72xf32, #tpu.memory_space<smem>>
    %c5_i32_55 = arith.constant 5 : i32
    %255 = arith.addi %239, %c5_i32_55 : i32
    %256 = arith.index_cast %255 : i32 to index
    %257 = memref.load %arg2[%256] : memref<72xf32, #tpu.memory_space<smem>>
    %c6_i32_56 = arith.constant 6 : i32
    %258 = arith.addi %239, %c6_i32_56 : i32
    %259 = arith.index_cast %258 : i32 to index
    %260 = memref.load %arg2[%259] : memref<72xf32, #tpu.memory_space<smem>>
    %c7_i32_57 = arith.constant 7 : i32
    %261 = arith.addi %239, %c7_i32_57 : i32
    %262 = arith.index_cast %261 : i32 to index
    %263 = memref.load %arg2[%262] : memref<72xf32, #tpu.memory_space<smem>>
    %c8_i32_58 = arith.constant 8 : i32
    %264 = arith.addi %239, %c8_i32_58 : i32
    %265 = arith.index_cast %264 : i32 to index
    %266 = memref.load %arg2[%265] : memref<72xf32, #tpu.memory_space<smem>>
    %267 = vector.broadcast %242 : f32 to vector<2x128xf32>
    %268 = arith.mulf %267, %32 : vector<2x128xf32>
    %269 = vector.broadcast %245 : f32 to vector<2x128xf32>
    %270 = arith.mulf %269, %33 : vector<2x128xf32>
    %271 = arith.addf %268, %270 : vector<2x128xf32>
    %272 = vector.broadcast %248 : f32 to vector<2x128xf32>
    %273 = arith.addf %271, %272 : vector<2x128xf32>
    %274 = vector.broadcast %251 : f32 to vector<2x128xf32>
    %275 = arith.mulf %274, %32 : vector<2x128xf32>
    %276 = vector.broadcast %254 : f32 to vector<2x128xf32>
    %277 = arith.mulf %276, %33 : vector<2x128xf32>
    %278 = arith.addf %275, %277 : vector<2x128xf32>
    %279 = vector.broadcast %257 : f32 to vector<2x128xf32>
    %280 = arith.addf %278, %279 : vector<2x128xf32>
    %281 = vector.broadcast %260 : f32 to vector<2x128xf32>
    %282 = arith.mulf %281, %32 : vector<2x128xf32>
    %283 = vector.broadcast %263 : f32 to vector<2x128xf32>
    %284 = arith.mulf %283, %33 : vector<2x128xf32>
    %285 = arith.addf %282, %284 : vector<2x128xf32>
    %286 = vector.broadcast %266 : f32 to vector<2x128xf32>
    %287 = arith.addf %285, %286 : vector<2x128xf32>
    %cst_59 = arith.constant 1.000000e+00 : f32
    %288 = vector.broadcast %cst_59 : f32 to vector<2x128xf32>
    %289 = arith.divf %288, %287 : vector<2x128xf32>
    %290 = arith.mulf %273, %289 : vector<2x128xf32>
    %cst_60 = arith.constant 1.000000e+00 : f32
    %291 = vector.broadcast %cst_60 : f32 to vector<2x128xf32>
    %292 = arith.subf %290, %291 : vector<2x128xf32>
    %293 = arith.mulf %280, %289 : vector<2x128xf32>
    %cst_61 = arith.constant 1.000000e+00 : f32
    %294 = vector.broadcast %cst_61 : f32 to vector<2x128xf32>
    %295 = arith.subf %293, %294 : vector<2x128xf32>
    %c0_62 = arith.constant 0 : index
    %c3 = arith.constant 3 : index
    %c0_63 = arith.constant 0 : index
    %c0_64 = arith.constant 0 : index
    %296 = vector.load %arg3[%c0_62, %c3, %c0_63, %c0_64] : memref<1x4x2x128xf32, #tpu.memory_space<vmem>>, vector<1x1x2x128xf32>
    %297 = vector.shape_cast %296 : vector<1x1x2x128xf32> to vector<2x128xf32>
    %298 = arith.mulf %297, %238 : vector<2x128xf32>
    %299 = arith.mulf %298, %292 : vector<2x128xf32>
    %300 = arith.addf %233, %299 : vector<2x128xf32>
    %301 = arith.mulf %298, %295 : vector<2x128xf32>
    %302 = arith.addf %235, %301 : vector<2x128xf32>
    %c0_65 = arith.constant 0 : index
    %c0_66 = arith.constant 0 : index
    %c0_67 = arith.constant 0 : index
    %c0_68 = arith.constant 0 : index
    %303 = vector.load %arg4[%c0_65, %c0_66, %c0_67, %c0_68] : memref<1x2x2x128xf32, #tpu.memory_space<vmem>>, vector<1x1x2x128xf32>
    %304 = vector.shape_cast %303 : vector<1x1x2x128xf32> to vector<2x128xf32>
    %305 = vector.shape_cast %300 : vector<2x128xf32> to vector<1x1x2x128xf32>
    tpu.vector_store %arg4[%c0_65, %c0_66, %c0_67, %c0_68], %305 {strides = array<i32>} : memref<1x2x2x128xf32, #tpu.memory_space<vmem>>, vector<1x1x2x128xf32>,
    %c0_69 = arith.constant 0 : index
    %c1_70 = arith.constant 1 : index
    %c0_71 = arith.constant 0 : index
    %c0_72 = arith.constant 0 : index
    %306 = vector.load %arg4[%c0_69, %c1_70, %c0_71, %c0_72] : memref<1x2x2x128xf32, #tpu.memory_space<vmem>>, vector<1x1x2x128xf32>
    %307 = vector.shape_cast %306 : vector<1x1x2x128xf32> to vector<2x128xf32>
    %308 = vector.shape_cast %302 : vector<2x128xf32> to vector<1x1x2x128xf32>
    tpu.vector_store %arg4[%c0_69, %c1_70, %c0_71, %c0_72], %308 {strides = array<i32>} : memref<1x2x2x128xf32, #tpu.memory_space<vmem>>, vector<1x1x2x128xf32>,
    return
  }
  func.func @transform_0(%arg0: i32, %arg1: i32) -> i32 {
    %c0_i32 = arith.constant 0 : i32
    %c0_i32_0 = arith.constant 0 : i32
    return %c0_i32 : i32
  }
  func.func @transform_1(%arg0: i32, %arg1: i32) -> (i32, i32, i32, i32) {
    %c0_i32 = arith.constant 0 : i32
    %c0_i32_0 = arith.constant 0 : i32
    %c0_i32_1 = arith.constant 0 : i32
    return %arg0, %c0_i32, %arg1, %c0_i32_0 : i32, i32, i32, i32
  }
  func.func @transform_2(%arg0: i32, %arg1: i32) -> (i32, i32, i32, i32) {
    %c0_i32 = arith.constant 0 : i32
    %c0_i32_0 = arith.constant 0 : i32
    %c0_i32_1 = arith.constant 0 : i32
    return %arg0, %c0_i32, %arg1, %c0_i32_0 : i32, i32, i32, i32
  }
}

</mosaic_0001>

<bundles_post_ra>
// kernel: tpu_custom_call.1
= control target key start
LH: loop header
LB: loop body
LE: loop exit
PB: predicated region body
PF: predicated region fallthrough
CT: control target
= control target key end

     0   :  { %s1309_s0 = inlined_call_operand.hbm [shape: f32[72], index: 0, kind: input, shape index: {}]   ;;  %s1310_s1 = inlined_call_operand.hbm [shape: f32[2,4,2,128], index: 1, kind: input, shape index: {}]   ;;  %s1311_s2 = inlined_call_operand.hbm [shape: f32[2,2,2,128], index: 2, kind: output, shape index: {}]  }
   0x1   :  { %1320 = sst [smem:[#allocation19_spill]] %s1309_s0 }
   0x2   :  { %1321 = sst [smem:[#allocation20_spill]] %s1310_s1 }
   0x3   :  { %7 = vsyncpa [#allocation5], 0 }
   0x4   :  { %8 = vsyncpa [#allocation3], 0 }
   0x5   :  { %10 = vsyncpa [#allocation3 + $0x1], 0 }
   0x6   :  { %11 = vsyncpa [#allocation4], 0 }
   0x7   :  { %13 = vsyncpa [#allocation4 + $0x1], 0  ;;  %s886_s9 = smov 0   ;;  %s888_s10 = smov 0  }
   0x8   :  { %s890_s11 = smov 0   ;;  %s892_s12 = smov 0  }
   0x9   :  { %s894_s13 = smov 0   ;;  %s896_s14 = smov 0  }
   0xa LB: > { %1322 = sst [smem:[#allocation11_spill]] %s843_s9  ;;  %s609_s15 = sadd.s32 4294967295, %s863_s14   ;;  %s863_s14 = sphi %s896_s14, %s19_s14   ;;  %s859_s13 = sphi %s894_s13, %s1352_s13   ;;  %s855_s12 = sphi %s892_s12, %s1351_s12   ;;  %s851_s11 = sphi %s890_s11, %s1350_s11   ;;  %s847_s10 = sphi %s888_s10, %s1349_s10   ;;  %s843_s9 = sphi %s886_s9, %s1348_s9  }
   0xb   : > { %1323 = sst [smem:[#allocation12_spill]] %s847_s10  ;;  %s610_s16 = sadd.s32 4294967294, %s863_s14  }
   0xc   : > { %1324 = sst [smem:[#allocation13_spill]] %s851_s11  ;;  %s61_s17 = sadd.s32 1, %s851_s11 }
   0xd   : > { %1325 = sst [smem:[#allocation14_spill]] %s859_s13  ;;  %p68_p0 = scmp.ne.s32.totalorder %s851_s11, %s847_s10 }
   0xe   : > { %1326 = sst [smem:[#allocation15_spill]] %s863_s14  ;;  %p69_p1 = scmp.eq.s32.totalorder %s863_s14, 0 }
   0xf   : > { %p74_p2 = scmp.ne.s32.totalorder %s847_s10, %s843_s9  ;;  %p924_p3 = scmp.eq.s32.totalorder %s609_s15, 0 }
  0x10   : > { %p100_p4 = scmp.eq.s32.totalorder %s609_s15, 1  ;;  %p928_p5 = por %p69_p1, %p68_p0 }
  0x11   : > { %p106_p6 = scmp.eq.s32.totalorder %s610_s16, 1  ;;  %p934_p7 = por %p924_p3, %p74_p2 }
  0x12   : > { %p938_p8 = por %p100_p4, %p68_p0  ;;  %p611_p10 = scmp.ge.s32.totalorder %s863_s14, 1 }
  0x13   : > { %p942_p9 = por %p106_p6, %p74_p2  ;;  %p113_p11 = scmp.lt.s32.totalorder %s863_s14, 3 }
  0x14   : > { %s1333_s0 = sld [smem:[#allocation19_spill]]  ;;  %p613_p13 = scmp.ge.s32.totalorder %s863_s14, 2 }
  0x15   : > { %s1331_s22 = scalar_select %p942_p9, 1, 0 }
  0x16   : > { %p951_p12 = pnand %p611_p10, %p113_p11  ;;  %p665_p0 = scmp.lt.s32.totalorder %s863_s14, 2 }
  0x17   : > { %1332 = sst [smem:[#allocation16_spill]] %s1331_s22  ;;  %s31_s28 = sadd.s32 1, %s859_s13 }
  0x18   : > { %p652_p1 = pneg %p951_p12  ;;  %p961_p2 = pnand %p665_p0, %p928_p5 }
  0x19   : > { %p33_p6 = scmp.ge.s32.totalorder %s31_s28, 2  ;;  %s136_s29 = sand.u32 1, %s851_s11  }
  0x1a   : > { %s125_s25 = sshll.u32 %s1333_s0, 4  ;;  %p653_p4 = pnand %p652_p1, %p924_p3  ;;  %s126_s25 = int_to_ptr.hbm [resolvable:$true] %s125_s25 }
  0x1b   : > { %s865_s30 = smov [#allocation2]   ;;  %s1354_s28 = smov (%p33_p6, %s31_s28), 0 }
  0x1c   : > { %655 = dma.hbm_to_smem (!%p653_p4), %s126_s25, 16, %s865_s30, [#allocation5]  }
  0x1d   : > { %1336 = sst [smem:[#allocation17_spill]] %s1354_s28  ;;  %s614_s3 = sshll.u32 %s136_s29, 3 }
  0x1e   : > { %s56_s4 = ssub.s32 %s859_s13, %s1354_s28  ;;  %s640_s5 = sshll.u32 %s859_s13, 3 }
  0x1f   : > { %p59_p10 = scmp.eq.s32.totalorder %s56_s4, 0  ;;  %s1337_s1 = sld [smem:[#allocation20_spill]] }
  0x20   : > { %s140_s15 = scalar_lea.vmem [#allocation6], %s614_s3  ;;  %s137_s24 = scalar_lea.sflag [#allocation3], %s136_s29 }
  0x21   : > { %s149_s16 = sshll.u32 %s140_s15, 4  ;;  %s866_s25 = smov 32   ;;  %s150_s16 = int_to_ptr.vmem [resolvable:$true] %s149_s16 }
  0x22   : > { %s980_s19 = scalar_select %p59_p10, %s851_s11, %s61_s17  }
  0x23   : > { %s867_s30 = smov 2   ;;  %161 = sbr.rel (%p951_p12) target bundleno = 130 (0x82), region = 28 }
  0x24   : > { %1338 = sst [smem:[#allocation18_spill]] %s980_s19 }
  0x25   : > { %s146_s8 = scalar_lea.hbm %s1337_s1, %s640_s5 }
  0x26   : > { %s147_s23 = sshll.u32 %s146_s8, 4  ;;  %s148_s23 = int_to_ptr.hbm [resolvable:$true] %s147_s23 }
  0x27   : > { %659 = dma.hbm_to_vmem [thread:$0]  (!%p961_p2), %s148_s23, 128, %s150_s16, %s137_s24, %s866_s25, %s866_s25, %s867_s30  }
  0x28   : > { %830 = dma.done.wait (%p924_p3), [#allocation5], 16  }
  0x29   : > { %832 = vsyncadd (%p924_p3), [#allocation5], 4294967280  ;;  %s991_s17 = sand.u32 1, %s847_s10  }
  0x2a   : > { %s619_s29 = sshll.u32 %s991_s17, 3  ;;  %s169_s3 = scalar_lea.sflag [#allocation3], %s991_s17 }
  0x2b   : > { %s995_s4 = scalar_lea.vmem [#allocation6], %s619_s29 }
  0x2c   : > { %834 = dma.done.wait (%p934_p7), %s169_s3, 128  }
  0x2d   : > { %836 = vsyncadd (%p934_p7), %s169_s3, 4294967168 }
  0x2e   : > { %178 = sfence }
  0x2f   : > { %v195_v0 = vlaneseq  ;;  %v868_v1 = vmov 16.0   ;;  %s1002_s18 = smul.u32 36, %s855_s12  ;;  %v1105_v49 = vld [vmem:[%s995_s4] sm:$0x3]  ;;  %v1108_v50 = vld [vmem:[%s995_s4 + $0x2] sm:$0x3] }
  0x30   : > { %722 = vrcp.f32 %v868_v1  ;;  %v292_v61 = vsub.f32 1.0, %v1105_v49  ;;  %v358_v62 = vsub.f32 1.0, %v1108_v50 }
  0x31   : > { %v196_v2 = vshrl.u32 %v195_v0, 7  ;;  %v198_v3 = vand.u32 127, %v195_v0  ;;  %s231_s20 = sadd.s32 1, %s1002_s18  ;;  %s233_s26 = sadd.s32 2, %s1002_s18 }
  0x32   : > { %s1007_s27 = sld [smem:[#allocation2 + %s1002_s18]]  ;;  %s235_s5 = sadd.s32 3, %s1002_s18 }
  0x33   : > { %v202_v4 = vmul.u32 128, %v196_v2  ;;  %s1010_s6 = sld [smem:[#allocation2 + %s231_s20]]  ;;  %s237_s7 = sadd.s32 4, %s1002_s18 }
  0x34   : > { %s1013_s8 = sld [smem:[#allocation2 + %s233_s26]]  ;;  %s239_s15 = sadd.s32 5, %s1002_s18 }
  0x35   : > { %v203_v7 = vadd.s32 %v202_v4, %v198_v3  ;;  %s1016_s16 = sld [smem:[#allocation2 + %s235_s5]]  ;;  %s241_s23 = sadd.s32 6, %s1002_s18 }
  0x36   : > { %v723_v5 = vpop.eup %722  ;;  %s1019_s24 = sld [smem:[#allocation2 + %s237_s7]]  ;;  %s243_s25 = sadd.s32 7, %s1002_s18 }
  0x37   : > { %v206_v6 = vmul.f32 16.0, %v723_v5  ;;  %v204_v10 = vcvt.s32.f32 %v203_v7  ;;  %vm210_vm0 = vweird.f32 %v723_v5  ;;  %s1022_s30 = sld [smem:[#allocation2 + %s239_s15]]  ;;  %s245_s29 = sadd.s32 8, %s1002_s18 }
  0x38   : > { %s1025_s3 = sld [smem:[#allocation2 + %s241_s23]]  ;;  %s293_s20 = sadd.s32 9, %s1002_s18  ;;  %v247_v33 = vstv %s1007_s27 }
  0x39   : > { %v207_v8 = vsub.f32 1.0, %v206_v6  ;;  %s1028_s26 = sld [smem:[#allocation2 + %s243_s25]]  ;;  %s305_s5 = sadd.s32 15, %s1002_s18  ;;  %v249_v34 = vstv %s1010_s6 }
  0x3a   : > { %s1031_s0 = sld [smem:[#allocation2 + %s245_s29]]  ;;  %s307_s7 = sadd.s32 16, %s1002_s18  ;;  %v252_v60 = vstv %s1013_s8 }
  0x3b   : > { %v208_v9 = vmul.f32 %v723_v5, %v207_v8  ;;  %s1034_s1 = sld [smem:[#allocation2 + %s293_s20]]  ;;  %s295_s15 = sadd.s32 10, %s1002_s18  ;;  %v254_v36 = vstv %s1016_s16 }
  0x3c   : > { %s299_s28 = sadd.s32 12, %s1002_s18  ;;  %s1038_s23 = sld [smem:[#allocation2 + %s305_s5]]  ;;  %v256_v40 = vstv %s1019_s24 }
  0x3d   : > { %v209_v11 = vadd.f32 %v723_v5, %v208_v9  ;;  %s301_s13 = sadd.s32 13, %s1002_s18  ;;  %s1041_s19 = sld [smem:[#allocation2 + %s307_s7]]  ;;  %v259_v63 = vstv %s1022_s30 }
  0x3e   : > { %s1043_s25 = sld [smem:[#allocation2 + %s295_s15]]  ;;  %s309_s29 = sadd.s32 17, %s1002_s18  ;;  %v261_v28 = vstv %s1025_s3 }
  0x3f   : > { %v211_v12 = vsel %vm210_vm0, %v723_v5, %v209_v11  ;;  %s1046_s20 = sld [smem:[#allocation2 + %s299_s28]]  ;;  %s372_s11 = sadd.s32 24, %s1002_s18  ;;  %v263_v25 = vstv %s1028_s26 }
  0x40   : > { %v212_v13 = vmul.f32 %v211_v12, %v204_v10  ;;  %s1049_s10 = sld [smem:[#allocation2 + %s301_s13]]  ;;  %s374_s5 = sadd.s32 25, %s1002_s18  ;;  %v266_v37 = vstv %s1031_s0  ;;  %v1146_v12 = vmul.f32 %v358_v62, %v292_v61 }
  0x41   : > { %s297_s7 = sadd.s32 11, %s1002_s18  ;;  %s1053_s14 = sld [smem:[#allocation2 + %s309_s29]]  ;;  %v311_v42 = vstv %s1034_s1 }
  0x42   : > { %v213_v14 = vfloor.f32 %v212_v13  ;;  %s303_s15 = sadd.s32 14, %s1002_s18  ;;  %s1056_s28 = sld [smem:[#allocation2 + %s372_s11]]  ;;  %v325_v30 = vstv %s1038_s23 }
  0x43   : > { %s360_s13 = sadd.s32 18, %s1002_s18  ;;  %s1060_s22 = sld [smem:[#allocation2 + %s374_s5]]  ;;  %v327_v31 = vstv %s1041_s19 }
  0x44   : > { %v643_v15 = vcvt.f32.s32 %v213_v14  ;;  %s1065_s29 = sld [smem:[#allocation2 + %s297_s7]]  ;;  %s362_s9 = sadd.s32 19, %s1002_s18  ;;  %v313_v44 = vstv %s1043_s25 }
  0x45   : > { %s1070_s11 = sld [smem:[#allocation2 + %s303_s15]]  ;;  %s364_s26 = sadd.s32 20, %s1002_s18  ;;  %v318_v45 = vstv %s1046_s20 }
  0x46   : > { %v215_v16 = vmul.u32 16, %v643_v15  ;;  %v621_v17 = vadd.s32 4294967295, %v643_v15  ;;  %s1076_s5 = sld [smem:[#allocation2 + %s360_s13]]  ;;  %s376_s3 = sadd.s32 26, %s1002_s18  ;;  %v320_v46 = vstv %s1049_s10 }
  0x47   : > { %s1082_s7 = sld [smem:[#allocation2 + %s362_s9]]  ;;  %s366_s23 = sadd.s32 21, %s1002_s18  ;;  %v330_v43 = vstv %s1053_s14 }
  0x48   : > { %v216_v18 = vsub.s32 %v203_v7, %v215_v16  ;;  %s1089_s19 = sld [smem:[#allocation2 + %s364_s26]]  ;;  %s368_s27 = sadd.s32 22, %s1002_s18  ;;  %v392_v51 = vstv %s1056_s28 }
  0x49   : > { %s1095_s9 = sld [smem:[#allocation2 + %s376_s3]]  ;;  %v394_v52 = vstv %s1060_s22  ;;  %s439_s1 = sadd.s32 33, %s1002_s18 }
  0x4a   : > { %vm217_vm1 = vcmp.lt.s32.totalorder %v216_v18, 0  ;;  %v220_v19 = vadd.s32 16, %v216_v18  ;;  %s1100_s0 = sld [smem:[#allocation2 + %s366_s23]]  ;;  %s441_s10 = sadd.s32 34, %s1002_s18  ;;  %v316_v0 = vstv %s1065_s29 }
  0x4b   : > { %v219_v20 = vsel %vm217_vm1, %v621_v17, %v643_v15  ;;  %s1110_s6 = sld [smem:[#allocation2 + %s368_s27]]  ;;  %s443_s22 = sadd.s32 35, %s1002_s18  ;;  %v323_v11 = vstv %s1070_s11 }
  0x4c   : > { %v221_v21 = vsel %vm217_vm1, %v220_v19, %v216_v18  ;;  %v223_v22 = vadd.s32 1, %v219_v20  ;;  %v378_v4 = vstv %s1076_s5  ;;  %s1136_s14 = sld [smem:[#allocation2 + %s439_s1]]  ;;  %s370_s16 = sadd.s32 23, %s1002_s18 }
  0x4d   : > { %vm222_vm2 = vcmp.ge.s32.totalorder %v221_v21, 16  ;;  %v622_v23 = vadd.s32 4294967280, %v221_v21  ;;  %v380_v9 = vstv %s1082_s7  ;;  %s1141_s8 = sld [smem:[#allocation2 + %s441_s10]]  ;;  %s427_s24 = sadd.s32 27, %s1002_s18 }
  0x4e   : > { %v224_v24 = vsel %vm222_vm2, %v223_v22, %v219_v20  ;;  %v383_v13 = vstv %s1089_s19  ;;  %s1156_s30 = sld [smem:[#allocation2 + %s443_s22]]  ;;  %s429_s25 = sadd.s32 28, %s1002_s18 }
  0x4f   : > { %v226_v26 = vsel %vm222_vm2, %v622_v23, %v221_v21  ;;  %v1062_v27 = vcvt.s32.f32 %v224_v24  ;;  %v397_v10 = vstv %s1095_s9  ;;  %s1172_s20 = sld [smem:[#allocation2 + %s370_s16]]  ;;  %s433_s15 = sadd.s32 30, %s1002_s18 }
  0x50   : > { %v1068_v29 = vcvt.s32.f32 %v226_v26  ;;  %v385_v18 = vstv %s1100_s0  ;;  %s1178_s28 = sld [smem:[#allocation2 + %s427_s24]]  ;;  %s435_s13 = sadd.s32 31, %s1002_s18 }
  0x51   : > { %v264_v32 = vmul.f32 %v263_v25, %v1062_v27  ;;  %v328_v39 = vmul.f32 %v327_v31, %v1062_v27  ;;  %v250_v54 = vmul.f32 %v249_v34, %v1062_v27  ;;  %v257_v55 = vmul.f32 %v256_v40, %v1062_v27  ;;  %s1183_s29 = sld [smem:[#allocation2 + %s429_s25]]  ;;  %s431_s5 = sadd.s32 29, %s1002_s18 }
  0x52   : > { %v262_v35 = vmul.f32 %v261_v28, %v1068_v29  ;;  %v326_v38 = vmul.f32 %v325_v30, %v1068_v29  ;;  %v248_v53 = vmul.f32 %v247_v33, %v1068_v29  ;;  %v255_v57 = vmul.f32 %v254_v36, %v1068_v29  ;;  %s1189_s11 = sld [smem:[#allocation2 + %s433_s15]]  ;;  %s437_s3 = sadd.s32 32, %s1002_s18 }
  0x53   : > { %v312_v58 = vmul.f32 %v311_v42, %v1068_v29  ;;  %v314_v59 = vmul.f32 %v313_v44, %v1062_v27  ;;  %v319_v1 = vmul.f32 %v318_v45, %v1068_v29  ;;  %v321_v2 = vmul.f32 %v320_v46, %v1062_v27  ;;  %s1200_s26 = sld [smem:[#allocation2 + %s435_s13]]  ;;  %s620_s23 = sshll.u32 %s991_s17, 2 }
  0x54   : > { %v265_v41 = vadd.f32 %v264_v32, %v262_v35  ;;  %v329_v47 = vadd.f32 %v328_v39, %v326_v38  ;;  %v251_v3 = vadd.f32 %v250_v54, %v248_v53  ;;  %v393_v5 = vmul.f32 %v392_v51, %v1068_v29  ;;  %s1231_s7 = sld [smem:[#allocation2 + %s431_s5]]  ;;  %s641_s19 = sshll.u32 %s855_s12, 2 }
  0x55   : > { %v395_v6 = vmul.f32 %v394_v52, %v1062_v27  ;;  %v258_v7 = vadd.f32 %v257_v55, %v255_v57  ;;  %v315_v8 = vadd.f32 %v314_v59, %v312_v58  ;;  %v322_v16 = vadd.f32 %v321_v2, %v319_v1  ;;  %s1248_s18 = sld [smem:[#allocation2 + %s437_s3]]  ;;  %s508_s0 = scalar_lea.hbm %s1311_s2, %s641_s19 }
  0x56   : > { %v1102_v48 = vadd.f32 %v266_v37, %v265_v41  ;;  %v1117_v56 = vadd.f32 %v330_v43, %v329_v47  ;;  %v379_v17 = vmul.f32 %v378_v4, %v1068_v29  ;;  %v387_v19 = vstv %s1110_s6  ;;  %s194_s6 = scalar_lea.vmem [#allocation7], %s620_s23  ;;  %s496_s1 = scalar_lea.sflag [#allocation4], %s991_s17 }
  0x57   : > { %v396_v14 = vadd.f32 %v395_v6, %v393_v5  ;;  %v1158_v21 = vadd.f32 %v252_v60, %v251_v3  ;;  %v381_v23 = vmul.f32 %v380_v9, %v1062_v27  ;;  %v1166_v25 = vadd.f32 %v259_v63, %v258_v7  ;;  %s509_s12 = sshll.u32 %s194_s6, 4  ;;  %s797_s16 = scalar_lea.hbm %s1311_s2, 8  ;;  %s510_s12 = int_to_ptr.vmem [resolvable:$true] %s509_s12 }
  0x58   : > { %724 = vrcp.f32 %v1102_v48  ;;  %vm273_vm3 = vweird.f32 %v1102_v48  ;;  %v1169_v26 = vadd.f32 %v316_v0, %v315_v8  ;;  %v279_v31 = vand.u32 2147483648, %v1102_v48 }
  0x59   : > { %726 = vrcp.f32 %v1117_v56  ;;  %v1163_v24 = vadd.f32 %v397_v10, %v396_v14  ;;  %vm337_vm5 = vweird.f32 %v1117_v56  ;;  %v343_v33 = vand.u32 2147483648, %v1117_v56 }
  0x5a   : > { %v277_v35 = vand.u32 2147483647, %v1102_v48  ;;  %v341_v36 = vand.u32 2147483647, %v1117_v56  ;;  %v386_v37 = vmul.f32 %v385_v18, %v1068_v29  ;;  %v388_v40 = vmul.f32 %v387_v19, %v1062_v27 }
  0x5b   : > { %728 = vrcp.f32 %v1163_v24  ;;  %v459_v41 = vstv %s1136_s14  ;;  %v461_v42 = vstv %s1141_s8  ;;  %v382_v45 = vadd.f32 %v381_v23, %v379_v17  ;;  %v630_v17 = vld [vmem:[%s995_s4 + $0x4] sm:$0x3] }
  0x5c   : > { %v460_v46 = vmul.f32 %v459_v41, %v1068_v29  ;;  %v462_v47 = vmul.f32 %v461_v42, %v1062_v27  ;;  %v344_v52 = vor.u32 1.1754944e-38, %v343_v33  ;;  %v464_v53 = vstv %s1156_s30 }
  0x5d   : > { %vm278_vm9 = vcmp.eq.f32.partialorder %v277_v35, 8.507059e+37  ;;  %vm342_vm10 = vcmp.eq.f32.partialorder %v341_v36, 8.507059e+37  ;;  %v324_v57 = vadd.f32 %v323_v11, %v322_v16  ;;  %v389_v59 = vadd.f32 %v388_v40, %v386_v37 }
  0x5e   : > { %v1150_v15 = vpop.eup %724  ;;  %vm404_vm11 = vweird.f32 %v1163_v24  ;;  %v408_v62 = vand.u32 2147483647, %v1163_v24  ;;  %v410_v63 = vand.u32 2147483648, %v1163_v24  ;;  %v384_v4 = vadd.f32 %v383_v13, %v382_v45 }
  0x5f   : > { %v727_v20 = vpop.eup %726  ;;  %v269_v22 = vmul.f32 %v1150_v15, %v1102_v48  ;;  %vm274_vm4 = vweird.f32 %v1150_v15  ;;  %v280_v48 = vor.u32 1.1754944e-38, %v279_v31  ;;  %v390_v5 = vstv %s1172_s20 }
  0x60   : > { %v333_v28 = vmul.f32 %v727_v20, %v1117_v56  ;;  %vm338_vm6 = vweird.f32 %v727_v20  ;;  %vm1195_vm7 = vmor %vm273_vm3, %vm274_vm4  ;;  %v463_v56 = vadd.f32 %v462_v47, %v460_v46  ;;  %v445_v6 = vstv %s1178_s28 }
  0x61   : > { %v270_v30 = vsub.f32 1.0, %v269_v22  ;;  %vm1208_vm8 = vmor %vm337_vm5, %vm338_vm6  ;;  %v729_v54 = vpop.eup %728  ;;  %v447_v8 = vstv %s1183_s29  ;;  %v452_v9 = vstv %s1189_s11  ;;  %v454_v10 = vstv %s1200_s26 }
  0x62   : > { %v334_v32 = vsub.f32 1.0, %v333_v28  ;;  %v400_v60 = vmul.f32 %v729_v54, %v1163_v24  ;;  %v1225_v0 = vadd.f32 %v464_v53, %v463_v56  ;;  %vm405_vm12 = vweird.f32 %v729_v54 }
  0x63   : > { %v271_v34 = vmul.f32 %v1150_v15, %v270_v30  ;;  %vm1243_vm13 = vmor %vm404_vm11, %vm405_vm12  ;;  %v411_v16 = vor.u32 1.1754944e-38, %v410_v63  ;;  %v391_v19 = vadd.f32 %v390_v5, %v389_v59  ;;  %vm409_vm14 = vcmp.eq.f32.partialorder %v408_v62, 8.507059e+37 }
  0x64   : > { %v335_v39 = vmul.f32 %v727_v20, %v334_v32  ;;  %v401_v3 = vsub.f32 1.0, %v400_v60  ;;  %730 = vrcp.f32 %v1225_v0  ;;  %v448_v22 = vmul.f32 %v447_v8, %v1062_v27 }
  0x65   : > { %v272_v43 = vadd.f32 %v1150_v15, %v271_v34  ;;  %v453_v23 = vmul.f32 %v452_v9, %v1068_v29  ;;  %v455_v24 = vmul.f32 %v454_v10, %v1062_v27  ;;  %v420_v28 = vmul.f32 %v630_v17, %v1146_v12 }
  0x66   : > { %v336_v51 = vadd.f32 %v727_v20, %v335_v39  ;;  %v402_v7 = vmul.f32 %v729_v54, %v401_v3  ;;  %v425_v30 = vsub.f32 1.0, %v630_v17  ;;  %v450_v39 = vstv %s1231_s7 }
  0x67   : > { %v276_v55 = vsel %vm1195_vm7, %v1150_v15, %v272_v43  ;;  %vm471_vm15 = vweird.f32 %v1225_v0  ;;  %v475_v41 = vand.u32 2147483647, %v1225_v0  ;;  %v457_v45 = vstv %s1248_s18 }
  0x68   : > { %v340_v58 = vsel %vm1208_vm8, %v727_v20, %v336_v51  ;;  %v281_v1 = vsel %vm278_vm9, %v280_v48, %v276_v55  ;;  %v403_v20 = vadd.f32 %v729_v54, %v402_v7 }
  0x69   : > { %v345_v2 = vsel %vm342_vm10, %v344_v52, %v340_v58  ;;  %v283_v11 = vmul.f32 %v281_v1, %v1158_v21  ;;  %v285_v14 = vmul.f32 %v281_v1, %v1166_v25  ;;  %v446_v21 = vmul.f32 %v445_v6, %v1068_v29  ;;  %v633_v58 = vld [vmem:[%s995_s4 + $0x6] sm:$0x3]  ;;  %s511_s4 = sshll.u32 %s508_s0, 4  ;;  %s512_s4 = int_to_ptr.hbm [resolvable:$true] %s511_s4 }
  0x6a   : > { %v347_v15 = vmul.f32 %v345_v2, %v1169_v26  ;;  %v349_v18 = vmul.f32 %v345_v2, %v324_v57  ;;  %v353_v25 = vmul.f32 %v1108_v50, %v292_v61  ;;  %v407_v26 = vsel %vm1243_vm13, %v729_v54, %v403_v20  ;;  %v731_v31 = vpop.eup %730  ;;  %s791_s10 = sshra.s32 %s512_s4, 4  ;;  %s792_s10 = int_to_ptr.hbm [resolvable:$true] %s791_s10 }
  0x6b   : > { %v623_v32 = vadd.f32 -1.0, %v283_v11  ;;  %v624_v33 = vadd.f32 -1.0, %v285_v14  ;;  %v412_v35 = vsel %vm409_vm14, %v411_v16, %v407_v26  ;;  %v467_v27 = vmul.f32 %v731_v31, %v1225_v0  ;;  %s793_s14 = scalar_lea.hbm %s792_s10, 4  ;;  %p798_p11 = scmp.lt.s32.totalorder %s792_s10, %s1311_s2 }
  0x6c   : > { %v625_v34 = vadd.f32 -1.0, %v347_v15  ;;  %v626_v29 = vadd.f32 -1.0, %v349_v18  ;;  %v414_v36 = vmul.f32 %v412_v35, %v384_v4  ;;  %v416_v37 = vmul.f32 %v412_v35, %v391_v19  ;;  %p794_p3 = scmp.ne.s32.totalorder %s792_s10, %s793_s14  ;;  %p799_p12 = scmp.lt.s32.totalorder %s797_s16, %s793_s14 }
  0x6d   : > { %v449_v38 = vadd.f32 %v448_v22, %v446_v21  ;;  %v456_v50 = vadd.f32 %v455_v24, %v453_v23  ;;  %v477_v61 = vand.u32 2147483648, %v1225_v0  ;;  %v468_v40 = vsub.f32 1.0, %v467_v27 }
  0x6e   : > { %vm472_vm0 = vweird.f32 %v731_v31  ;;  %v288_v42 = vmul.f32 %v623_v32, %v1105_v49  ;;  %v290_v43 = vmul.f32 %v624_v33, %v1105_v49  ;;  %v354_v44 = vmul.f32 %v625_v34, %v353_v25  ;;  %p795_p5 = pnand %p794_p3, %p938_p8  ;;  %p800_p0 = por %p799_p12, %p798_p11 }
  0x6f   : > { %v356_v46 = vmul.f32 %v626_v29, %v353_v25  ;;  %v628_v47 = vadd.f32 -1.0, %v414_v36  ;;  %v629_v48 = vadd.f32 -1.0, %v416_v37  ;;  %v469_v51 = vmul.f32 %v731_v31, %v468_v40  ;;  %vm473_vm1 = vmor %vm471_vm15, %vm472_vm0 }
  0x70   : > { %v426_v52 = vmul.f32 %v425_v30, %v1146_v12  ;;  %v478_v53 = vor.u32 1.1754944e-38, %v477_v61  ;;  %v451_v54 = vadd.f32 %v450_v39, %v449_v38  ;;  %v458_v55 = vadd.f32 %v457_v45, %v456_v50  ;;  %p796_p7 = pneg %p795_p5 }
  0x71   : > { %v470_v56 = vadd.f32 %v731_v31, %v469_v51  ;;  %vm476_vm2 = vcmp.eq.f32.partialorder %v475_v41, 8.507059e+37  ;;  %v355_v57 = vadd.f32 %v354_v44, %v288_v42  ;;  %v357_v49 = vadd.f32 %v356_v46, %v290_v43 }
  0x72   : > { %v421_v59 = vmul.f32 %v628_v47, %v420_v28  ;;  %v423_v60 = vmul.f32 %v629_v48, %v420_v28  ;;  %v487_v2 = vmul.f32 %v633_v58, %v426_v52  ;;  %p801_p1 = pnand %p800_p0, %p796_p7 }
  0x73   : > { %v474_v62 = vsel %vm473_vm1, %v731_v31, %v470_v56 }
  0x74   : > { %v479_v63 = vsel %vm476_vm2, %v478_v53, %v474_v62  ;;  %v422_v12 = vadd.f32 %v421_v59, %v355_v57  ;;  %v424_v3 = vadd.f32 %v423_v60, %v357_v49 }
  0x75   : > { %v481_v0 = vmul.f32 %v479_v63, %v451_v54  ;;  %v483_v1 = vmul.f32 %v479_v63, %v458_v55 }
  0x77   : > { %v631_v4 = vadd.f32 -1.0, %v481_v0  ;;  %v632_v5 = vadd.f32 -1.0, %v483_v1 }
  0x79   : > { %v488_v6 = vmul.f32 %v631_v4, %v487_v2  ;;  %v490_v7 = vmul.f32 %v632_v5, %v487_v2 }
  0x7b   : > { %v489_v8 = vadd.f32 %v488_v6, %v422_v12  ;;  %v491_v9 = vadd.f32 %v490_v7, %v424_v3 }
  0x7d   : > { %492 = vst [vmem:[%s194_s6] sm:$0x3] %v489_v8 }
  0x7e   : > { %634 = vst [vmem:[%s194_s6 + $0x2] sm:$0x3] %v491_v9 }
  0x7f   : > { %804 = shalt.err (!%p801_p1)
}
  0x80   : > { %s869_s17 = smov 32   ;;  %s870_s25 = smov 2  }
  0x81   : > { %650 = dma.vmem_to_hbm [thread:$0]  (%p938_p8), %s510_s12, 64, %s512_s4, %s496_s1, %s869_s17, %s869_s17, %s870_s25  }
  0x82 PF: > { %s1345_s20 = sld [smem:[#allocation11_spill]]  ;;  %p661_p2 = pnand %p613_p13, %p942_p9 }
  0x83   : > { %s1347_s28 = sld [smem:[#allocation15_spill]] }
  0x84   : > { %p662_p4 = pneg %p661_p2 }
  0x88   : > { %s526_s13 = sand.u32 1, %s1345_s20  }
  0x89   : > { %s527_s29 = scalar_lea.sflag [#allocation4], %s526_s13 }
  0x8a   : > { %838 = dma.done.wait (%p662_p4), %s527_s29, 64  }
  0x8b   : > { %840 = vsyncadd (%p662_p4), %s527_s29, 4294967232  ;;  %s19_s14 = sadd.s32 1, %s1347_s28   ;;  %s1348_s9 = sld [smem:[#allocation12_spill]] }
  0x8c   : > { %p16_p6 = scmp.ge.s32.totalorder %s19_s14, 4   ;;  %s1349_s10 = sld [smem:[#allocation13_spill]] }
  0x8d   : > { %s1350_s11 = sld [smem:[#allocation18_spill]] }
  0x8e   : > { %s1351_s12 = sld [smem:[#allocation14_spill]]  ;;  %18 = sbr.rel (!%p16_p6) target bundleno = 10 (0xa), region = 82 }
  0x8f   : > { %s1352_s13 = sld [smem:[#allocation17_spill]] }
  0x93   :  { %533 = vsyncpa [#allocation3], 1 }
  0x94   :  { %535 = vsyncpa [#allocation3 + $0x1], 1 }
  0x95   :  { %536 = vsyncpa [#allocation4], 1 }
  0x96   :  { %538 = vsyncpa [#allocation4 + $0x1], 1 }
  0x97   :  { %539 = vsyncpa [#allocation5], 1 }
  0x98   :  { %541 = vsyncpa [#allocation5 + $0x1], 1 }

</bundles_post_ra>
